<compile_context>
chip_gen: v7x
topology: tpu7x:2x2x1
jax: 0.10.0
libtpu: 0.0.40
codegen_flags: <defaults>
</compile_context>

<pallas_src>
import functools

import jax
import jax.numpy as jnp
from jax.experimental import pallas as pl
from jax.experimental.pallas import tpu as pltpu


def _round_up(x, m):
    return ((x + m - 1) // m) * m


# ---------------------------------------------------------------------------
# Kernels
# ---------------------------------------------------------------------------
def _ffn_resident_kernel(x_ref, w1_ref, b1_ref, w2_ref, b2_ref, gamma_ref,
                         beta_ref, o_ref, *, eps):
    """Weights fully VMEM-resident; grid is row tiles only."""
    x = x_ref[...]
    # GEMM 1: [tm, d_model] @ [d_model, d_inner] -> f32 accumulation on MXU.
    h = jnp.dot(x, w1_ref[...], preferred_element_type=jnp.float32)
    h = jnp.maximum(h + b1_ref[...], 0.0)                     # b1 already f32
    # GEMM 2: [tm, d_inner] @ [d_inner, d_model] -> f32.
    y = jnp.dot(h.astype(w2_ref.dtype), w2_ref[...],
                preferred_element_type=jnp.float32)
    # TODO(synk): dropout skipped (inference-mode identity).
    y = y + b2_ref[...] + x.astype(jnp.float32)               # residual add
    mean = jnp.mean(y, axis=-1, keepdims=True)
    centered = y - mean
    var = jnp.mean(centered * centered, axis=-1, keepdims=True)
    normed = centered * jax.lax.rsqrt(var + eps)
    o_ref[...] = (normed * gamma_ref[...] + beta_ref[...]).astype(o_ref.dtype)


def _ffn_streaming_kernel(x_ref, w1_ref, b1_ref, w2_ref, b2_ref, gamma_ref,
                          beta_ref, o_ref, acc_ref, *, eps):
    """d_inner streamed in slabs (grid axis 1, 'arbitrary'); f32 accumulator."""
    k = pl.program_id(1)

    @pl.when(k == 0)
    def _init():
        acc_ref[...] = jnp.zeros_like(acc_ref)

    h = jnp.dot(x_ref[...], w1_ref[...], preferred_element_type=jnp.float32)
    h = jnp.maximum(h + b1_ref[...], 0.0)                     # b1 already f32
    acc_ref[...] += jnp.dot(h.astype(w2_ref.dtype), w2_ref[...],
                            preferred_element_type=jnp.float32)

    @pl.when(k == pl.num_programs(1) - 1)
    def _finalize():
        # TODO(synk): dropout skipped (inference-mode identity).
        y = acc_ref[...] + b2_ref[...] + x_ref[...].astype(jnp.float32)
        mean = jnp.mean(y, axis=-1, keepdims=True)
        centered = y - mean
        var = jnp.mean(centered * centered, axis=-1, keepdims=True)
        normed = centered * jax.lax.rsqrt(var + eps)
        o_ref[...] = (normed * gamma_ref[...] + beta_ref[...]).astype(o_ref.dtype)


# ---------------------------------------------------------------------------
# VMEM budgeting / tile selection
# ---------------------------------------------------------------------------
def _vmem_budget():
    try:
        cap = int(pltpu.get_tpu_info().vmem_capacity_bytes)
    except Exception:
        cap = 64 * 1024 * 1024  # conservative default (v7x per-core VMEM)
    # ~15% headroom for compiler-internal scratch / semaphores:
    #   v5e/v6e (128 MiB) -> ~108 MiB, v7x (64 MiB) -> ~54 MiB.
    return (cap * 85) // 100


def _resident_bytes(row_tile, d_model, d_inner, x_isz, w_isz, o_isz):
    xb = 2 * row_tile * d_model * x_isz           # double-buffered x tile
    ob = 2 * row_tile * d_model * o_isz           # double-buffered out tile
    wb = 2 * 2 * d_model * d_inner * w_isz        # w1 + w2 (count 2 bufs each)
    hb = row_tile * d_inner * 4                   # f32 intermediate h
    ep = 2 * row_tile * d_model * 4               # f32 epilogue temporaries
    sm = 4 * (2 * d_inner + 6 * d_model) * 4      # biases / gamma / beta
    return xb + ob + wb + hb + ep + sm


def _streaming_bytes(row_tile, d_model, inner_tile, x_isz, w_isz, o_isz):
    xb = 2 * row_tile * d_model * x_isz
    ob = 2 * row_tile * d_model * o_isz
    wb = 2 * 2 * d_model * inner_tile * w_isz     # w1/w2 slabs, double-buffered
    acc = row_tile * d_model * 4                  # f32 accumulator scratch
    hb = row_tile * inner_tile * 4                # f32 intermediate h slab
    ep = 2 * row_tile * d_model * 4
    sm = 4 * (2 * inner_tile + 6 * d_model) * 4
    return xb + ob + wb + acc + hb + ep + sm


def _choose_streaming_tiles(d_model, d_inner, x_isz, w_isz, o_isz,
                            vmem_limit, row_tile):
    """Pick (row_tile, inner_tile).  inner_tile prefers multiples of 256
    (full 2x256^2 MXU occupancy on v6e/v7x); 128 is the fallback."""
    rt = row_tile
    while True:
        top = max(256, min(4096, _round_up(d_inner, 256)))
        for it in list(range(top, 0, -256)) + [128]:
            if _streaming_bytes(rt, d_model, it, x_isz, w_isz, o_isz) <= vmem_limit:
                return rt, it
        if rt <= 8:
            return 8, 128
        rt = max(8, ((rt // 2) // 8) * 8)


# ---------------------------------------------------------------------------
# Wrapper
# ---------------------------------------------------------------------------
def positionwise_feed_forward(x, w1, b1, w2, b2, gamma, beta,
                              *, eps=1e-6, row_tile=512):
    """y = LayerNorm(x + W2 relu(W1 x + b1) + b2); x: [B, S, d_model]."""
    B, S, d_model = x.shape
    d_inner = w1.shape[1]
    rows = B * S

    x_isz = x.dtype.itemsize
    w_isz = w1.dtype.itemsize
    o_isz = x.dtype.itemsize
    vmem_limit = _vmem_budget()

    # Row tiling: large (512) for real workloads so weight traffic is amortized
    # and the MXU sees full-height pushes; shrunk (8-aligned) for tiny inputs.
    rows_8 = _round_up(rows, 8)
    row_tile = max(8, min(_round_up(row_tile, 8), rows_8))

    x2d = x.reshape(rows, d_model)
    if rows_8 != rows:
        # Rare (rows % 8 != 0): pad only to the next sublane multiple.  Ragged
        # last *row tile* is handled by Pallas masked writes; LayerNorm is
        # per-row so junk tail rows cannot contaminate valid rows.
        x2d = jnp.pad(x2d, ((0, rows_8 - rows), (0, 0)))

    # Small params go in as f32 so the kernel body has no per-step casts.
    f32 = jnp.float32
    b1_2d = b1.reshape(1, d_inner).astype(f32)
    b2_2d = b2.reshape(1, d_model).astype(f32)
    gamma_2d = gamma.reshape(1, d_model).astype(f32)
    beta_2d = beta.reshape(1, d_model).astype(f32)

    # TODO(synk): if the model owner accepts bf16 MXU numerics, cast w1/w2 (and
    # optionally x) to bf16 here; accumulation stays f32 either way.

    resident = (_resident_bytes(row_tile, d_model, d_inner, x_isz, w_isz, o_isz)
                <= vmem_limit)

    if resident:
        num_row_tiles = pl.cdiv(rows_8, row_tile)
        flops = 4 * rows_8 * d_model * d_inner
        bytes_accessed = (2 * rows_8 * d_model * x_isz             # x in, y out
                          + 2 * d_model * d_inner * w_isz          # weights once
                          + (2 * d_inner + 6 * d_model) * 4)       # small vecs
        cost = pl.CostEstimate(flops=flops, transcendentals=rows_8,
                               bytes_accessed=int(bytes_accessed))
        out2d = pl.pallas_call(
            functools.partial(_ffn_resident_kernel, eps=eps),
            out_shape=jax.ShapeDtypeStruct((rows_8, d_model), x.dtype),
            grid_spec=pltpu.PrefetchScalarGridSpec(
                num_scalar_prefetch=0,
                grid=(num_row_tiles,),
                in_specs=[
                    pl.BlockSpec((row_tile, d_model), lambda i: (i, 0)),  # x
                    pl.BlockSpec((d_model, d_inner), lambda i: (0, 0)),   # w1 (resident)
                    pl.BlockSpec((1, d_inner), lambda i: (0, 0)),         # b1
                    pl.BlockSpec((d_inner, d_model), lambda i: (0, 0)),   # w2 (resident)
                    pl.BlockSpec((1, d_model), lambda i: (0, 0)),         # b2
                    pl.BlockSpec((1, d_model), lambda i: (0, 0)),         # gamma
                    pl.BlockSpec((1, d_model), lambda i: (0, 0)),         # beta
                ],
                out_specs=pl.BlockSpec((row_tile, d_model), lambda i: (i, 0)),
            ),
            compiler_params=pltpu.CompilerParams(
                dimension_semantics=("parallel",),
                vmem_limit_bytes=int(vmem_limit),
            ),
            cost_estimate=cost,
        )(x2d, w1, b1_2d, w2, b2_2d, gamma_2d, beta_2d)
    else:
        row_tile, inner_tile = _choose_streaming_tiles(
            d_model, d_inner, x_isz, w_isz, o_isz, vmem_limit, row_tile)
        d_inner_p = _round_up(d_inner, inner_tile)
        if d_inner_p != d_inner:
            # Zero-padded inner columns contribute exactly 0: relu(0 + 0) = 0,
            # and the corresponding w2 rows are zero.
            pad = d_inner_p - d_inner
            w1 = jnp.pad(w1, ((0, 0), (0, pad)))
            w2 = jnp.pad(w2, ((0, pad), (0, 0)))
            b1_2d = jnp.pad(b1_2d, ((0, 0), (0, pad)))
        num_row_tiles = pl.cdiv(rows_8, row_tile)
        num_inner_tiles = d_inner_p // inner_tile
        flops = 4 * rows_8 * d_model * d_inner_p
        bytes_accessed = (2 * rows_8 * d_model * x_isz
                          + num_row_tiles * 2 * d_model * d_inner_p * w_isz
                          + num_row_tiles * (2 * d_inner_p + 6 * d_model) * 4)
        cost = pl.CostEstimate(flops=flops, transcendentals=rows_8,
                               bytes_accessed=int(bytes_accessed))
        out2d = pl.pallas_call(
            functools.partial(_ffn_streaming_kernel, eps=eps),
            out_shape=jax.ShapeDtypeStruct((rows_8, d_model), x.dtype),
            grid_spec=pltpu.PrefetchScalarGridSpec(
                num_scalar_prefetch=0,
                grid=(num_row_tiles, num_inner_tiles),
                in_specs=[
                    pl.BlockSpec((row_tile, d_model), lambda i, k: (i, 0)),   # x
                    pl.BlockSpec((d_model, inner_tile), lambda i, k: (0, k)), # w1 slab
                    pl.BlockSpec((1, inner_tile), lambda i, k: (0, k)),       # b1 slab
                    pl.BlockSpec((inner_tile, d_model), lambda i, k: (k, 0)), # w2 slab
                    pl.BlockSpec((1, d_model), lambda i, k: (0, 0)),          # b2
                    pl.BlockSpec((1, d_model), lambda i, k: (0, 0)),          # gamma
                    pl.BlockSpec((1, d_model), lambda i, k: (0, 0)),          # beta
                ],
                out_specs=pl.BlockSpec((row_tile, d_model), lambda i, k: (i, 0)),
                scratch_shapes=[pltpu.VMEM((row_tile, d_model), jnp.float32)],
            ),
            compiler_params=pltpu.CompilerParams(
                dimension_semantics=("parallel", "arbitrary"),
                vmem_limit_bytes=int(vmem_limit),
            ),
            cost_estimate=cost,
        )(x2d, w1, b1_2d, w2, b2_2d, gamma_2d, beta_2d)

    if rows_8 != rows:
        out2d = out2d[:rows]
    return out2d.reshape(B, S, d_model)


def _reference(x, w1, b1, w2, b2, gamma, beta, eps=1e-6):
    residual = x
    h = jnp.maximum(x @ w1 + b1, 0.0)
    y = h @ w2 + b2
    y = y + residual
    mean = jnp.mean(y, axis=-1, keepdims=True)
    var = jnp.mean((y - mean) ** 2, axis=-1, keepdims=True)
    return (y - mean) / jnp.sqrt(var + eps) * gamma + beta


if __name__ == "__main__":
    B, S, d_model, d_inner = 2, 8, 32, 64

    key = jax.random.PRNGKey(0)
    kx, k1, kb1, k2, kb2 = jax.random.split(key, 5)

    x = jax.random.normal(kx, (B, S, d_model), dtype=jnp.float32)

    # Deterministic "Linear"-style init (uniform, scaled like PyTorch default).
    lim1 = 1.0 / (d_model ** 0.5)
    lim2 = 1.0 / (d_inner ** 0.5)
    w1 = jax.random.uniform(k1, (d_model, d_inner), minval=-lim1, maxval=lim1,
                            dtype=jnp.float32)
    b1 = jax.random.uniform(kb1, (d_inner,), minval=-lim1, maxval=lim1,
                            dtype=jnp.float32)
    w2 = jax.random.uniform(k2, (d_inner, d_model), minval=-lim2, maxval=lim2,
                            dtype=jnp.float32)
    b2 = jax.random.uniform(kb2, (d_model,), minval=-lim2, maxval=lim2,
                            dtype=jnp.float32)
    gamma = jnp.ones((d_model,), dtype=jnp.float32)
    beta = jnp.zeros((d_model,), dtype=jnp.float32)

    out = positionwise_feed_forward(x, w1, b1, w2, b2, gamma, beta)
    out = jax.block_until_ready(out)

    ref = _reference(x, w1, b1, w2, b2, gamma, beta)
    assert out.shape == (B, S, d_model)
    assert jnp.allclose(out, ref, atol=1e-5, rtol=1e-5), "mismatch vs reference"

    print("KERNEL_OK")
</pallas_src>

<mosaic_0001>
module attributes {stable_mosaic.version = 11 : i64} {
  func.func @_ffn_resident_kernel(%arg0: i32, %arg1: memref<16x32xf32, #tpu.memory_space<vmem>>, %arg2: memref<32x64xf32, #tpu.memory_space<vmem>>, %arg3: memref<1x64xf32, #tpu.memory_space<vmem>>, %arg4: memref<64x32xf32, #tpu.memory_space<vmem>>, %arg5: memref<1x32xf32, #tpu.memory_space<vmem>>, %arg6: memref<1x32xf32, #tpu.memory_space<vmem>>, %arg7: memref<1x32xf32, #tpu.memory_space<vmem>>, %arg8: memref<16x32xf32, #tpu.memory_space<vmem>>) attributes {dimension_semantics = [#tpu.dimension_semantics<parallel>], iteration_bounds = array<i64: 1>, scalar_prefetch = 0 : i64, scratch_operands = 0 : i64, tpu.core_type = #tpu.core_type<tc>, window_params = [{transform_indices = @transform_0, window_bounds = array<i64: 16, 32>}, {pipeline_mode = #tpu.pipeline_mode<synchronous>, transform_indices = @transform_1, window_bounds = array<i64: 32, 64>}, {pipeline_mode = #tpu.pipeline_mode<synchronous>, transform_indices = @transform_2, window_bounds = array<i64: 1, 64>}, {pipeline_mode = #tpu.pipeline_mode<synchronous>, transform_indices = @transform_3, window_bounds = array<i64: 64, 32>}, {pipeline_mode = #tpu.pipeline_mode<synchronous>, transform_indices = @transform_4, window_bounds = array<i64: 1, 32>}, {pipeline_mode = #tpu.pipeline_mode<synchronous>, transform_indices = @transform_5, window_bounds = array<i64: 1, 32>}, {pipeline_mode = #tpu.pipeline_mode<synchronous>, transform_indices = @transform_6, window_bounds = array<i64: 1, 32>}, {transform_indices = @transform_7, window_bounds = array<i64: 16, 32>}]} {
    %c0 = arith.constant 0 : index
    %c0_0 = arith.constant 0 : index
    %0 = vector.load %arg1[%c0, %c0_0] : memref<16x32xf32, #tpu.memory_space<vmem>>, vector<16x32xf32>
    %c0_1 = arith.constant 0 : index
    %c0_2 = arith.constant 0 : index
    %1 = vector.load %arg2[%c0_1, %c0_2] : memref<32x64xf32, #tpu.memory_space<vmem>>, vector<32x64xf32>
    %cst = arith.constant dense<0.000000e+00> : vector<16x64xf32>
    %2 = tpu.matmul %0, %1, %cst {dimension_numbers = #tpu.dot_dimension_numbers<[1], [0], [0], [1], [0, 0, 1, 1], [], []>} : vector<16x32xf32>, vector<32x64xf32>, vector<16x64xf32> -> vector<16x64xf32>
    %c0_3 = arith.constant 0 : index
    %c0_4 = arith.constant 0 : index
    %3 = vector.load %arg3[%c0_3, %c0_4] : memref<1x64xf32, #tpu.memory_space<vmem>>, vector<1x64xf32>
    %4 = vector.broadcast %3 : vector<1x64xf32> to vector<16x64xf32>
    %5 = arith.addf %2, %4 : vector<16x64xf32>
    %cst_5 = arith.constant 0.000000e+00 : f32
    %6 = vector.broadcast %cst_5 : f32 to vector<16x64xf32>
    %7 = arith.maximumf %5, %6 : vector<16x64xf32>
    %c0_6 = arith.constant 0 : index
    %c0_7 = arith.constant 0 : index
    %8 = vector.load %arg4[%c0_6, %c0_7] : memref<64x32xf32, #tpu.memory_space<vmem>>, vector<64x32xf32>
    %cst_8 = arith.constant dense<0.000000e+00> : vector<16x32xf32>
    %9 = tpu.matmul %7, %8, %cst_8 {dimension_numbers = #tpu.dot_dimension_numbers<[1], [0], [0], [1], [0, 0, 1, 1], [], []>} : vector<16x64xf32>, vector<64x32xf32>, vector<16x32xf32> -> vector<16x32xf32>
    %c0_9 = arith.constant 0 : index
    %c0_10 = arith.constant 0 : index
    %10 = vector.load %arg5[%c0_9, %c0_10] : memref<1x32xf32, #tpu.memory_space<vmem>>, vector<1x32xf32>
    %11 = vector.broadcast %10 : vector<1x32xf32> to vector<16x32xf32>
    %12 = arith.addf %9, %11 : vector<16x32xf32>
    %13 = arith.addf %12, %0 : vector<16x32xf32>
    %cst_11 = arith.constant dense<0.000000e+00> : vector<16xf32>
    %14 = vector.multi_reduction <add>, %13, %cst_11 [1] : vector<16x32xf32> to vector<16xf32>
    %15 = vector.shape_cast %14 : vector<16xf32> to vector<16x1xf32>
    %cst_12 = arith.constant 3.200000e+01 : f32
    %16 = vector.broadcast %cst_12 : f32 to vector<16x1xf32>
    %17 = arith.divf %15, %16 : vector<16x1xf32>
    %18 = vector.broadcast %17 : vector<16x1xf32> to vector<16x32xf32>
    %19 = arith.subf %13, %18 : vector<16x32xf32>
    %20 = arith.mulf %19, %19 : vector<16x32xf32>
    %cst_13 = arith.constant dense<0.000000e+00> : vector<16xf32>
    %21 = vector.multi_reduction <add>, %20, %cst_13 [1] : vector<16x32xf32> to vector<16xf32>
    %22 = vector.shape_cast %21 : vector<16xf32> to vector<16x1xf32>
    %cst_14 = arith.constant 3.200000e+01 : f32
    %23 = vector.broadcast %cst_14 : f32 to vector<16x1xf32>
    %24 = arith.divf %22, %23 : vector<16x1xf32>
    %cst_15 = arith.constant 9.99999997E-7 : f32
    %25 = vector.broadcast %cst_15 : f32 to vector<16x1xf32>
    %26 = arith.addf %24, %25 : vector<16x1xf32>
    %27 = math.rsqrt %26 : vector<16x1xf32>
    %28 = vector.broadcast %27 : vector<16x1xf32> to vector<16x32xf32>
    %29 = arith.mulf %19, %28 : vector<16x32xf32>
    %c0_16 = arith.constant 0 : index
    %c0_17 = arith.constant 0 : index
    %30 = vector.load %arg6[%c0_16, %c0_17] : memref<1x32xf32, #tpu.memory_space<vmem>>, vector<1x32xf32>
    %31 = vector.broadcast %30 : vector<1x32xf32> to vector<16x32xf32>
    %32 = arith.mulf %29, %31 : vector<16x32xf32>
    %c0_18 = arith.constant 0 : index
    %c0_19 = arith.constant 0 : index
    %33 = vector.load %arg7[%c0_18, %c0_19] : memref<1x32xf32, #tpu.memory_space<vmem>>, vector<1x32xf32>
    %34 = vector.broadcast %33 : vector<1x32xf32> to vector<16x32xf32>
    %35 = arith.addf %32, %34 : vector<16x32xf32>
    %c0_20 = arith.constant 0 : index
    %c0_21 = arith.constant 0 : index
    %36 = vector.load %arg8[%c0_20, %c0_21] : memref<16x32xf32, #tpu.memory_space<vmem>>, vector<16x32xf32>
    tpu.vector_store %arg8[%c0_20, %c0_21], %35 {strides = array<i32>} : memref<16x32xf32, #tpu.memory_space<vmem>>, vector<16x32xf32>,
    return
  }
  func.func @transform_0(%arg0: i32) -> (i32, i32) {
    %c0_i32 = arith.constant 0 : i32
    %c0_i32_0 = arith.constant 0 : i32
    return %arg0, %c0_i32 : i32, i32
  }
  func.func @transform_1(%arg0: i32) -> (i32, i32) {
    %c0_i32 = arith.constant 0 : i32
    %c0_i32_0 = arith.constant 0 : i32
    %c0_i32_1 = arith.constant 0 : i32
    return %c0_i32, %c0_i32_0 : i32, i32
  }
  func.func @transform_2(%arg0: i32) -> (i32, i32) {
    %c0_i32 = arith.constant 0 : i32
    %c0_i32_0 = arith.constant 0 : i32
    %c0_i32_1 = arith.constant 0 : i32
    return %c0_i32, %c0_i32_0 : i32, i32
  }
  func.func @transform_3(%arg0: i32) -> (i32, i32) {
    %c0_i32 = arith.constant 0 : i32
    %c0_i32_0 = arith.constant 0 : i32
    %c0_i32_1 = arith.constant 0 : i32
    return %c0_i32, %c0_i32_0 : i32, i32
  }
  func.func @transform_4(%arg0: i32) -> (i32, i32) {
    %c0_i32 = arith.constant 0 : i32
    %c0_i32_0 = arith.constant 0 : i32
    %c0_i32_1 = arith.constant 0 : i32
    return %c0_i32, %c0_i32_0 : i32, i32
  }
  func.func @transform_5(%arg0: i32) -> (i32, i32) {
    %c0_i32 = arith.constant 0 : i32
    %c0_i32_0 = arith.constant 0 : i32
    %c0_i32_1 = arith.constant 0 : i32
    return %c0_i32, %c0_i32_0 : i32, i32
  }
  func.func @transform_6(%arg0: i32) -> (i32, i32) {
    %c0_i32 = arith.constant 0 : i32
    %c0_i32_0 = arith.constant 0 : i32
    %c0_i32_1 = arith.constant 0 : i32
    return %c0_i32, %c0_i32_0 : i32, i32
  }
  func.func @transform_7(%arg0: i32) -> (i32, i32) {
    %c0_i32 = arith.constant 0 : i32
    %c0_i32_0 = arith.constant 0 : i32
    return %arg0, %c0_i32 : i32, i32
  }
}

</mosaic_0001>

<bundles_post_ra>
// kernel: tpu_custom_call.1
= control target key start
LH: loop header
LB: loop body
LE: loop exit
PB: predicated region body
PF: predicated region fallthrough
CT: control target
= control target key end

     0   :  { %vm40_vm0 = vcmask 261120   ;;  %s512_s0 = inlined_call_operand.vmem [shape: f32[16,32], index: 0, kind: input, shape index: {}]   ;;  %s513_s1 = inlined_call_operand.vmem [shape: f32[32,64], index: 1, kind: input, shape index: {}]   ;;  %s514_s2 = inlined_call_operand.vmem [shape: f32[1,64], index: 2, kind: input, shape index: {}]   ;;  %s515_s3 = inlined_call_operand.vmem [shape: f32[64,32], index: 3, kind: input, shape index: {}]   ;;  %s516_s4 = inlined_call_operand.vmem [shape: f32[1,32], index: 4, kind: input, shape index: {}]   ;;  %s517_s5 = inlined_call_operand.vmem [shape: f32[1,32], index: 5, kind: input, shape index: {}]   ;;  %s518_s6 = inlined_call_operand.vmem [shape: f32[1,32], index: 6, kind: input, shape index: {}]   ;;  %s519_s7 = inlined_call_operand.hbm [shape: f32[16,32], index: 7, kind: output, shape index: {}]  }
   0x1   :  { %v29_v0 = vld [vmem:[%s513_s1] sm:$0xff]  ;;  %v30_v1 = vld [vmem:[%s513_s1 + $0x8] sm:$0xff]  ;;  %v31_v2 = vld [vmem:[%s513_s1 + $0x10] sm:$0xff] }
   0x2   :  { %v340_v3 = vpack.c.bf16 %v30_v1, %v29_v0  ;;  %v32_v4 = vld [vmem:[%s513_s1 + $0x18] sm:$0xff]  ;;  %v27_v5 = vld [vmem:[%s512_s0] sm:$0xff]  ;;  %v125_v8 = vld [vmem:[%s515_s3 + $0x8] sm:$0xff] }
   0x3   :  { %v344_v6 = vpack.c.bf16 %v32_v4, %v31_v2  ;;  %318 = vmatprep.mubr.msk.f32.mxu0 %vm40_vm0, %v27_v5  ;;  %v124_v7 = vld [vmem:[%s515_s3] sm:$0xff]  ;;  %v126_v9 = vld [vmem:[%s515_s3 + $0x10] sm:$0xff]  ;;  %v127_v11 = vld [vmem:[%s515_s3 + $0x18] sm:$0xff] }
   0x4   :  { %341 = vmatprep.subr.bf16.mxu0 %v340_v3  ;;  %v348_v10 = vpack.c.bf16 %v125_v8, %v124_v7  ;;  %v352_v12 = vpack.c.bf16 %v127_v11, %v126_v9  ;;  %v128_v13 = vld [vmem:[%s515_s3 + $0x20] sm:$0xff]  ;;  %v129_v14 = vld [vmem:[%s515_s3 + $0x28] sm:$0xff] }
   0x5   :  { %343 = vmatpush3.bf16.msra.mxu0 %v340_v3 }
   0x6   :  { %12 = vsyncpa [#allocation3], 0  ;;  %345 = vmatprep.subr.bf16.mxu0 %v344_v6  ;;  %349 = vmatprep.subr.bf16.mxu1 %v348_v10  ;;  %v356_v15 = vpack.c.bf16 %v129_v14, %v128_v13  ;;  %v28_v16 = vld [vmem:[%s512_s0 + $0x8] sm:$0xff]  ;;  %v130_v17 = vld [vmem:[%s515_s3 + $0x30] sm:$0xff]  ;;  %vm139_vm1 = vcmask 523264   ;;  %s395_s9 = smov [#allocation2]  }
   0x7   :  { %351 = vmatpush3.bf16.msra.mxu1 %v348_v10  ;;  %v131_v18 = vld [vmem:[%s515_s3 + $0x38] sm:$0xff]  ;;  %v286_v20 = vld [vmem:[%s514_s2] ss:$0 sm:$0xff]  ;;  %s275_s10 = sshll.u32 %s395_s9, 4  ;;  %s276_s10 = int_to_ptr.vmem [resolvable:$true] %s275_s10 }
   0x8   :  { %353 = vmatprep.subr.bf16.mxu1 %v352_v12  ;;  %v360_v19 = vpack.c.bf16 %v131_v18, %v130_v17  ;;  %v289_v27 = vld [vmem:[%s516_s4] ss:$0 sm:$0xff]  ;;  %s371_s11 = scalar_lea.vmem %s276_s10, 256  ;;  %p376_p1 = scmp.lt.s32.totalorder %s276_s10, %s276_s10 }
   0x9   :  { %347 = vmatpush3.bf16.msra.mxu0 %v344_v6  ;;  %v292_v53 = vld [vmem:[%s517_s5] ss:$0 sm:$0xff]  ;;  %p372_p0 = scmp.ne.s32.totalorder %s276_s10, %s371_s11  ;;  %p377_p2 = scmp.lt.s32.totalorder %s371_s11, %s371_s11 }
   0xa   :  { %v293_v55 = vld [vmem:[%s518_s6] ss:$0 sm:$0xff] }
   0xb   :  { %355 = vmatpush3.bf16.msra.mxu1 %v352_v12  ;;  %p378_p3 = por %p377_p2, %p376_p1 }
   0xc   :  { %319 = vmatmul.mubr.msk.f32.vlgmr.msra.gmra.mrb[0].mxu0 %vm40_vm0, %v28_v16  ;;  %357 = vmatprep.subr.bf16.mxu1 %v356_v15 }
   0xd   :  { %p379_p4 = pnand %p378_p3, %p372_p0 }
   0xf   :  { %359 = vmatpush3.bf16.msra.mxu1 %v356_v15 }
  0x10   :  { %361 = vmatprep.subr.bf16.mxu1 %v360_v19 }
  0x13   :  { %363 = vmatpush3.bf16.msra.mxu1 %v360_v19 }
  0xdf   :  { %v320_v21 = vpop.f32.mrb[0].mxu0 }
  0xe0   :  { %v119_v22 = vadd.f32 %v320_v21, %v286_v20  ;;  %v113_v23 = vpop.f32.mrb[1].mxu0 }
  0xe1   :  { %v114_v24 = vadd.f32 %v286_v20, %v113_v23 }
  0xe2   :  { %v123_v26 = vmax.f32 %v119_v22, 0.0 }
  0xe3   :  { %v122_v25 = vmax.f32 %v114_v24, 0.0 }
  0xe5   :  { %337 = vmatprep.mubr.msk.f32.mxu1 %vm139_vm1, %v122_v25 }
  0xe6   :  { %338 = vmatmul.mubr.msk.f32.vlgmr.msra.gmra.mrb[0].mxu1 %vm139_vm1, %v123_v26 }
 0x1b9   :  { %v339_v28 = vpop.f32.mrb[0].mxu1 }
 0x1ba   :  { %v212_v29 = vpop.f32.mrb[1].mxu1  ;;  %v218_v30 = vadd.f32 %v339_v28, %v289_v27 }
 0x1bb   :  { %v213_v31 = vadd.f32 %v289_v27, %v212_v29 }
 0x1bc   :  { %v222_v34 = vadd.f32 %v218_v30, %v28_v16 }
 0x1bd   :  { %v221_v32 = vadd.f32 %v213_v31, %v27_v5 }
 0x1be   :  { %v226_v35 = vsel %vm40_vm0, %v222_v34, 0.0 }
 0x1bf   :  { %v223_v33 = vsel %vm40_vm0, %v221_v32, 0.0 }
 0x1c0   :  { %224 = vadd.xlane.f32.xlu0 %v223_v33 }
 0x1c4   :  { %227 = vadd.xlane.f32.xlu0 %v226_v35 }
 0x24d   :  { %v225_v36 = vpop.xlane.xlu0 %224 }
 0x24e   :  { %v230_v37 = vmul.f32 0.03125, %v225_v36 }
 0x250   :  { %v232_v38 = vsub.f32 %v221_v32, %v230_v37 }
 0x251   :  { %v228_v39 = vpop.xlane.xlu0 %227 }
 0x252   :  { %v231_v40 = vmul.f32 0.03125, %v228_v39  ;;  %v234_v41 = vmul.f32 %v232_v38, %v232_v38 }
 0x254   :  { %v233_v42 = vsub.f32 %v222_v34, %v231_v40  ;;  %v236_v43 = vsel %vm40_vm0, %v234_v41, 0.0 }
 0x255   :  { %237 = vadd.xlane.f32.xlu1 %v236_v43 }
 0x256   :  { %v235_v44 = vmul.f32 %v233_v42, %v233_v42 }
 0x258   :  { %v239_v45 = vsel %vm40_vm0, %v235_v44, 0.0 }
 0x259   :  { %240 = vadd.xlane.f32.xlu1 %v239_v45 }
 0x2e2   :  { %v238_v46 = vpop.xlane.xlu1 %237 }
 0x2e3   :  { %v242_v47 = vmul.f32 0.03125, %v238_v46 }
 0x2e5   :  { %v244_v48 = vadd.f32 1e-06, %v242_v47 }
 0x2e6   :  { %v241_v49 = vpop.xlane.xlu1 %240 }
 0x2e7   :  { %367 = vrsqrt.f32 %v244_v48  ;;  %v243_v50 = vmul.f32 0.03125, %v241_v49 }
 0x2e9   :  { %v245_v51 = vadd.f32 1e-06, %v243_v50 }
 0x2eb   :  { %369 = vrsqrt.f32 %v245_v51 }
 0x2f1   :  { %v368_v52 = vpop.eup %367 }
 0x2f2   :  { %v248_v54 = vmul.f32 %v368_v52, %v232_v38 }
 0x2f4   :  { %v257_v56 = vmul.f32 %v292_v53, %v248_v54 }
 0x2f5   :  { %v370_v57 = vpop.eup %369 }
 0x2f6   :  { %v249_v58 = vmul.f32 %v370_v57, %v233_v42  ;;  %v266_v59 = vadd.f32 %v293_v55, %v257_v56 }
 0x2f8   :  { %v258_v60 = vmul.f32 %v292_v53, %v249_v58  ;;  %268 = vst.msk [vmem:[#allocation2] sm:$0xff] %vm40_vm0, %v266_v59 }
 0x2fa   :  { %v267_v61 = vadd.f32 %v293_v55, %v258_v60 }
 0x2fc   :  { %269 = vst.msk [vmem:[#allocation2 + $0x8] sm:$0xff] %vm40_vm0, %v267_v61 }
 0x2fd   :  { %382 = shalt.err (!%p379_p4)
}
 0x2fe   :  { %s383_s12 = scalar_lea.hbm %s519_s7, 256 }
 0x2ff   :  { %p384_p5 = scmp.ne.s32.totalorder %s519_s7, %s383_s12  ;;  %p387_p6 = scmp.lt.u32.totalorder %s383_s12, %s519_s7 }
 0x301   :  { %p389_p7 = pnand %p387_p6, %p384_p5 }
 0x303   :  { %392 = shalt.err (!%p389_p7)
}
 0x304   :  { %s396_s1 = smov 128   ;;  %s397_s17 = smov 8  }
 0x305   :  { %281 = dma.vmem_to_hbm [thread:$0]  %s276_s10, 256, %s519_s7, [#allocation3], %s396_s1, %s396_s1, %s397_s17  }
 0x306   :  { %393 = dma.done.wait [#allocation3], 256  }
 0x307   :  { %394 = vsyncadd [#allocation3], 4294967040 }
 0x308   :  { %285 = vsyncpa [#allocation3], 1 }

</bundles_post_ra>
